<compile_context>
chip_gen: v5e
topology: v5e:2x2
jax: 0.10.0
libtpu: 0.0.40
codegen_flags: <defaults>
</compile_context>

<pallas_src>
import numpy as np
import jax
import jax.numpy as jnp
from jax import lax
from jax.experimental import pallas as pl
from jax.experimental.pallas import tpu as pltpu

MODEL_DIM = 32
N_HEAD = 4
HEAD_DIM = MODEL_DIM // N_HEAD
DROPOUT_RATE = 0.5
TEMPERATURE = float(DROPOUT_RATE)       # quirk: dropout_rate lands in `temperature`
INV_TEMPERATURE = 1.0 / TEMPERATURE     # Python float -> inlined literal, not captured
LN_EPS = 1e-5
NEG_BIG = -1e30                         # Python float, used only in wrapper-side mask

_DN_NT = (((1,), (1,)), ((), ()))       # contract last dims: A @ B.T (no materialized .T)


# ---------------- fused Pallas kernel ----------------

def _make_fused_kernel(B, S, M, H, D):
    BS = B * S
    N = BS * H   # (B*H) * S rows of the torch .view, stacked as (N, D)

    def kernel(x_ref, w_ref, hb_ref, rp_ref, bias_ref, o_ref):
        f32 = jnp.float32
        x = x_ref[...]                                             # (BS, M)

        def head_stack(w_base, hb_base):
            # Row block [h*BS, (h+1)*BS) of the result holds head-h features of
            # every input row: x @ W[h*D:(h+1)*D, :].T + b[h*D:(h+1)*D].
            # Stack index m = h*BS + r  <->  torch .view "chunk" row (see mask).
            pieces = []
            for h in range(H):
                w_h = w_ref[w_base + h * D: w_base + (h + 1) * D, :]   # (D, M)
                b_h = hb_ref[hb_base + h: hb_base + h + 1, :]          # (1, D)
                pieces.append(
                    lax.dot_general(x, w_h, _DN_NT,
                                    preferred_element_type=f32) + b_h)
            return jnp.concatenate(pieces, axis=0)                 # (N, D)

        qs = head_stack(0, 0) * INV_TEMPERATURE                    # q / temperature
        ks = head_stack(M, H)
        vs = head_stack(2 * M, 2 * H)

        # All-pairs segment scores + precomputed additive block-diagonal bias
        # (0 for same torch .view chunk, -1e30 otherwise) == per-(B*H) attention.
        s = lax.dot_general(qs, ks, _DN_NT, preferred_element_type=f32)  # (N, N)
        s = s + bias_ref[...]
        s = s - jnp.max(s, axis=-1, keepdims=True)
        p = jnp.exp(s)                                             # masked -> 0.0
        p = p * pl.reciprocal(jnp.sum(p, axis=-1, keepdims=True))  # exact reciprocal
        # TODO(synk): attention dropout (p=0.1) omitted — eval/inference semantics.
        ctx = jnp.dot(p, vs, preferred_element_type=f32)           # (N, D)

        # Inverse torch .view folded into the final linear:
        #   out2[:, h*D:(h+1)*D] = ctx[h*BS:(h+1)*BS, :]
        #   y = out2 @ Wf.T + bf = sum_h ctx[h*BS:(h+1)*BS, :] @ Wf^T[h*D:(h+1)*D, :] + bf
        wf_base = 3 * M
        y = jnp.dot(ctx[0:BS, :], w_ref[wf_base:wf_base + D, :],
                    preferred_element_type=f32)
        for h in range(1, H):
            y = y + jnp.dot(ctx[h * BS:(h + 1) * BS, :],
                            w_ref[wf_base + h * D: wf_base + (h + 1) * D, :],
                            preferred_element_type=f32)
        y = y + rp_ref[0:1, :]                                     # + bf
        # TODO(synk): output dropout (p=0.5) omitted — eval/inference semantics.

        # LayerNorm over model_dim.
        mu = jnp.mean(y, axis=-1, keepdims=True)
        var = jnp.mean((y - mu) ** 2, axis=-1, keepdims=True)
        o_ref[...] = ((y - mu) * lax.rsqrt(var + LN_EPS) * rp_ref[1:2, :]
                      + rp_ref[2:3, :])

    return kernel


# ---------------- wrapper ----------------

def multi_head_attention_pallas(x, params):
    B, S, M = x.shape
    H, D = N_HEAD, HEAD_DIM
    BS = B * S
    N = BS * H
    f32 = jnp.float32

    # Contiguity-preserving reshape only.
    x2 = x.reshape(BS, M)

    # Coalesced parameter slabs (3 small DMAs instead of 10).
    w_slab = jnp.concatenate(
        [params['wq'], params['wk'], params['wv'], params['wf'].T], axis=0)   # (4M, M)
    hb_slab = jnp.concatenate(
        [params['bq'].reshape(H, D), params['bk'].reshape(H, D),
         params['bv'].reshape(H, D)], axis=0)                                 # (3H, D)
    rp_slab = jnp.stack(
        [params['bf'], params['gamma'], params['beta']], axis=0)              # (3, M)

    # Compile-time block-diagonal mask bias: row m = h*BS + r belongs to torch
    # .view chunk ((r*H + h) // S); only same-chunk pairs attend.
    m_idx = np.arange(N)
    chunk = ((m_idx % BS) * H + m_idx // BS) // S
    mask_bias = np.where(chunk[:, None] == chunk[None, :], 0.0, NEG_BIG).astype(np.float32)
    mask_bias = jnp.asarray(mask_bias)                                        # (N, N)

    def vspec(shape):
        return pl.BlockSpec(shape, lambda i: (0,) * len(shape))

    kernel = _make_fused_kernel(B, S, M, H, D)

    out2 = pl.pallas_call(
        kernel,
        grid=(1,),
        in_specs=[vspec((BS, M)),
                  vspec((4 * M, M)),
                  vspec((3 * H, D)),
                  vspec((3, M)),
                  vspec((N, N))],
        out_specs=vspec((BS, M)),
        out_shape=jax.ShapeDtypeStruct((BS, M), f32),
        compiler_params=pltpu.CompilerParams(
            dimension_semantics=("arbitrary",)),
    )(x2, w_slab, hb_slab, rp_slab, mask_bias)

    return out2.reshape(B, S, M)


# ---------------- pure-JAX reference (PyTorch semantics, eval mode) ----------------

def multi_head_attention_ref(x, params):
    B, S, M = x.shape
    H, D = N_HEAD, HEAD_DIM
    q = x @ params['wq'].T + params['bq']
    k = x @ params['wk'].T + params['bk']
    v = x @ params['wv'].T + params['bv']
    q_ = q.reshape(B * H, S, D)
    k_ = k.reshape(B * H, S, D)
    v_ = v.reshape(B * H, S, D)
    attn = jnp.matmul(q_ / TEMPERATURE, jnp.swapaxes(k_, 1, 2))
    attn = jax.nn.softmax(attn, axis=-1)
    ctx = jnp.matmul(attn, v_)
    out = ctx.reshape(B, S, H * D)
    out = out @ params['wf'].T + params['bf']
    mu = out.mean(-1, keepdims=True)
    var = ((out - mu) ** 2).mean(-1, keepdims=True)
    return (out - mu) / jnp.sqrt(var + LN_EPS) * params['gamma'] + params['beta']


# ---------------- deterministic parameter init ----------------

def init_params(key, model_dim):
    ks = jax.random.split(key, 8)
    bound = 1.0 / float(np.sqrt(float(model_dim)))

    def lin(kw, kb):
        # PyTorch nn.Linear layout: W is (out_features, in_features)
        w = jax.random.uniform(kw, (model_dim, model_dim), jnp.float32, -bound, bound)
        b = jax.random.uniform(kb, (model_dim,), jnp.float32, -bound, bound)
        return w, b

    wq, bq = lin(ks[0], ks[1])
    wk, bk = lin(ks[2], ks[3])
    wv, bv = lin(ks[4], ks[5])
    wf, bf = lin(ks[6], ks[7])
    gamma = jnp.ones((model_dim,), jnp.float32)   # nn.LayerNorm default weight
    beta = jnp.zeros((model_dim,), jnp.float32)   # nn.LayerNorm default bias
    return dict(wq=wq, bq=bq, wk=wk, bk=bk, wv=wv, bv=bv, wf=wf, bf=bf,
                gamma=gamma, beta=beta)


if __name__ == "__main__":
    key = jax.random.PRNGKey(0)
    k_x, k_p = jax.random.split(key)
    B, S = 2, 8
    x = jax.random.normal(k_x, (B, S, MODEL_DIM), jnp.float32)
    params = init_params(k_p, MODEL_DIM)

    out = jax.jit(multi_head_attention_pallas)(x, params)
    out = jax.block_until_ready(out)

    ref = multi_head_attention_ref(x, params)
    assert out.shape == (B, S, MODEL_DIM)
    max_err = float(jnp.max(jnp.abs(out - ref)))
    assert jnp.allclose(out, ref, atol=1e-4, rtol=1e-4), f"max_err={max_err}"
    print("KERNEL_OK")
</pallas_src>

<mosaic_0001>
module attributes {stable_mosaic.version = 11 : i64} {
  func.func @kernel(%arg0: i32, %arg1: memref<16x32xf32, #tpu.memory_space<vmem>>, %arg2: memref<128x32xf32, #tpu.memory_space<vmem>>, %arg3: memref<12x8xf32, #tpu.memory_space<vmem>>, %arg4: memref<3x32xf32, #tpu.memory_space<vmem>>, %arg5: memref<64x64xf32, #tpu.memory_space<vmem>>, %arg6: memref<16x32xf32, #tpu.memory_space<vmem>>) attributes {dimension_semantics = [#tpu.dimension_semantics<arbitrary>], iteration_bounds = array<i64: 1>, scalar_prefetch = 0 : i64, scratch_operands = 0 : i64, tpu.core_type = #tpu.core_type<tc>, window_params = [{pipeline_mode = #tpu.pipeline_mode<synchronous>, transform_indices = @transform_0, window_bounds = array<i64: 16, 32>}, {pipeline_mode = #tpu.pipeline_mode<synchronous>, transform_indices = @transform_1, window_bounds = array<i64: 128, 32>}, {pipeline_mode = #tpu.pipeline_mode<synchronous>, transform_indices = @transform_2, window_bounds = array<i64: 12, 8>}, {pipeline_mode = #tpu.pipeline_mode<synchronous>, transform_indices = @transform_3, window_bounds = array<i64: 3, 32>}, {pipeline_mode = #tpu.pipeline_mode<synchronous>, transform_indices = @transform_4, window_bounds = array<i64: 64, 64>}, {pipeline_mode = #tpu.pipeline_mode<synchronous>, transform_indices = @transform_5, window_bounds = array<i64: 16, 32>}]} {
    %c0 = arith.constant 0 : index
    %c0_0 = arith.constant 0 : index
    %0 = vector.load %arg1[%c0, %c0_0] : memref<16x32xf32, #tpu.memory_space<vmem>>, vector<16x32xf32>
    %c0_1 = arith.constant 0 : index
    %c0_2 = arith.constant 0 : index
    %1 = vector.load %arg2[%c0_1, %c0_2] : memref<128x32xf32, #tpu.memory_space<vmem>>, vector<8x32xf32>
    %c0_3 = arith.constant 0 : index
    %c0_4 = arith.constant 0 : index
    %2 = vector.load %arg3[%c0_3, %c0_4] : memref<12x8xf32, #tpu.memory_space<vmem>>, vector<1x8xf32>
    %cst = arith.constant dense<0.000000e+00> : vector<16x8xf32>
    %3 = tpu.matmul %0, %1, %cst {dimension_numbers = #tpu.dot_dimension_numbers<[1], [1], [0], [0], [0, 0, 1, 0], [], []>} : vector<16x32xf32>, vector<8x32xf32>, vector<16x8xf32> -> vector<16x8xf32>
    %4 = vector.broadcast %2 : vector<1x8xf32> to vector<16x8xf32>
    %5 = arith.addf %3, %4 : vector<16x8xf32>
    %c8 = arith.constant 8 : index
    %c0_5 = arith.constant 0 : index
    %6 = vector.load %arg2[%c8, %c0_5] : memref<128x32xf32, #tpu.memory_space<vmem>>, vector<8x32xf32>
    %c1 = arith.constant 1 : index
    %c0_6 = arith.constant 0 : index
    %7 = vector.load %arg3[%c1, %c0_6] : memref<12x8xf32, #tpu.memory_space<vmem>>, vector<1x8xf32>
    %cst_7 = arith.constant dense<0.000000e+00> : vector<16x8xf32>
    %8 = tpu.matmul %0, %6, %cst_7 {dimension_numbers = #tpu.dot_dimension_numbers<[1], [1], [0], [0], [0, 0, 1, 0], [], []>} : vector<16x32xf32>, vector<8x32xf32>, vector<16x8xf32> -> vector<16x8xf32>
    %9 = vector.broadcast %7 : vector<1x8xf32> to vector<16x8xf32>
    %10 = arith.addf %8, %9 : vector<16x8xf32>
    %c16 = arith.constant 16 : index
    %c0_8 = arith.constant 0 : index
    %11 = vector.load %arg2[%c16, %c0_8] : memref<128x32xf32, #tpu.memory_space<vmem>>, vector<8x32xf32>
    %c2 = arith.constant 2 : index
    %c0_9 = arith.constant 0 : index
    %12 = vector.load %arg3[%c2, %c0_9] : memref<12x8xf32, #tpu.memory_space<vmem>>, vector<1x8xf32>
    %cst_10 = arith.constant dense<0.000000e+00> : vector<16x8xf32>
    %13 = tpu.matmul %0, %11, %cst_10 {dimension_numbers = #tpu.dot_dimension_numbers<[1], [1], [0], [0], [0, 0, 1, 0], [], []>} : vector<16x32xf32>, vector<8x32xf32>, vector<16x8xf32> -> vector<16x8xf32>
    %14 = vector.broadcast %12 : vector<1x8xf32> to vector<16x8xf32>
    %15 = arith.addf %13, %14 : vector<16x8xf32>
    %c24 = arith.constant 24 : index
    %c0_11 = arith.constant 0 : index
    %16 = vector.load %arg2[%c24, %c0_11] : memref<128x32xf32, #tpu.memory_space<vmem>>, vector<8x32xf32>
    %c3 = arith.constant 3 : index
    %c0_12 = arith.constant 0 : index
    %17 = vector.load %arg3[%c3, %c0_12] : memref<12x8xf32, #tpu.memory_space<vmem>>, vector<1x8xf32>
    %cst_13 = arith.constant dense<0.000000e+00> : vector<16x8xf32>
    %18 = tpu.matmul %0, %16, %cst_13 {dimension_numbers = #tpu.dot_dimension_numbers<[1], [1], [0], [0], [0, 0, 1, 0], [], []>} : vector<16x32xf32>, vector<8x32xf32>, vector<16x8xf32> -> vector<16x8xf32>
    %19 = vector.broadcast %17 : vector<1x8xf32> to vector<16x8xf32>
    %20 = arith.addf %18, %19 : vector<16x8xf32>
    %21 = tpu.concatenate %5, %10, %15, %20 in 0 : vector<16x8xf32>, vector<16x8xf32>, vector<16x8xf32>, vector<16x8xf32> -> vector<64x8xf32>
    %cst_14 = arith.constant 2.000000e+00 : f32
    %22 = vector.broadcast %cst_14 : f32 to vector<64x8xf32>
    %23 = arith.mulf %21, %22 : vector<64x8xf32>
    %c32 = arith.constant 32 : index
    %c0_15 = arith.constant 0 : index
    %24 = vector.load %arg2[%c32, %c0_15] : memref<128x32xf32, #tpu.memory_space<vmem>>, vector<8x32xf32>
    %c4 = arith.constant 4 : index
    %c0_16 = arith.constant 0 : index
    %25 = vector.load %arg3[%c4, %c0_16] : memref<12x8xf32, #tpu.memory_space<vmem>>, vector<1x8xf32>
    %cst_17 = arith.constant dense<0.000000e+00> : vector<16x8xf32>
    %26 = tpu.matmul %0, %24, %cst_17 {dimension_numbers = #tpu.dot_dimension_numbers<[1], [1], [0], [0], [0, 0, 1, 0], [], []>} : vector<16x32xf32>, vector<8x32xf32>, vector<16x8xf32> -> vector<16x8xf32>
    %27 = vector.broadcast %25 : vector<1x8xf32> to vector<16x8xf32>
    %28 = arith.addf %26, %27 : vector<16x8xf32>
    %c40 = arith.constant 40 : index
    %c0_18 = arith.constant 0 : index
    %29 = vector.load %arg2[%c40, %c0_18] : memref<128x32xf32, #tpu.memory_space<vmem>>, vector<8x32xf32>
    %c5 = arith.constant 5 : index
    %c0_19 = arith.constant 0 : index
    %30 = vector.load %arg3[%c5, %c0_19] : memref<12x8xf32, #tpu.memory_space<vmem>>, vector<1x8xf32>
    %cst_20 = arith.constant dense<0.000000e+00> : vector<16x8xf32>
    %31 = tpu.matmul %0, %29, %cst_20 {dimension_numbers = #tpu.dot_dimension_numbers<[1], [1], [0], [0], [0, 0, 1, 0], [], []>} : vector<16x32xf32>, vector<8x32xf32>, vector<16x8xf32> -> vector<16x8xf32>
    %32 = vector.broadcast %30 : vector<1x8xf32> to vector<16x8xf32>
    %33 = arith.addf %31, %32 : vector<16x8xf32>
    %c48 = arith.constant 48 : index
    %c0_21 = arith.constant 0 : index
    %34 = vector.load %arg2[%c48, %c0_21] : memref<128x32xf32, #tpu.memory_space<vmem>>, vector<8x32xf32>
    %c6 = arith.constant 6 : index
    %c0_22 = arith.constant 0 : index
    %35 = vector.load %arg3[%c6, %c0_22] : memref<12x8xf32, #tpu.memory_space<vmem>>, vector<1x8xf32>
    %cst_23 = arith.constant dense<0.000000e+00> : vector<16x8xf32>
    %36 = tpu.matmul %0, %34, %cst_23 {dimension_numbers = #tpu.dot_dimension_numbers<[1], [1], [0], [0], [0, 0, 1, 0], [], []>} : vector<16x32xf32>, vector<8x32xf32>, vector<16x8xf32> -> vector<16x8xf32>
    %37 = vector.broadcast %35 : vector<1x8xf32> to vector<16x8xf32>
    %38 = arith.addf %36, %37 : vector<16x8xf32>
    %c56 = arith.constant 56 : index
    %c0_24 = arith.constant 0 : index
    %39 = vector.load %arg2[%c56, %c0_24] : memref<128x32xf32, #tpu.memory_space<vmem>>, vector<8x32xf32>
    %c7 = arith.constant 7 : index
    %c0_25 = arith.constant 0 : index
    %40 = vector.load %arg3[%c7, %c0_25] : memref<12x8xf32, #tpu.memory_space<vmem>>, vector<1x8xf32>
    %cst_26 = arith.constant dense<0.000000e+00> : vector<16x8xf32>
    %41 = tpu.matmul %0, %39, %cst_26 {dimension_numbers = #tpu.dot_dimension_numbers<[1], [1], [0], [0], [0, 0, 1, 0], [], []>} : vector<16x32xf32>, vector<8x32xf32>, vector<16x8xf32> -> vector<16x8xf32>
    %42 = vector.broadcast %40 : vector<1x8xf32> to vector<16x8xf32>
    %43 = arith.addf %41, %42 : vector<16x8xf32>
    %44 = tpu.concatenate %28, %33, %38, %43 in 0 : vector<16x8xf32>, vector<16x8xf32>, vector<16x8xf32>, vector<16x8xf32> -> vector<64x8xf32>
    %c64 = arith.constant 64 : index
    %c0_27 = arith.constant 0 : index
    %45 = vector.load %arg2[%c64, %c0_27] : memref<128x32xf32, #tpu.memory_space<vmem>>, vector<8x32xf32>
    %c8_28 = arith.constant 8 : index
    %c0_29 = arith.constant 0 : index
    %46 = vector.load %arg3[%c8_28, %c0_29] : memref<12x8xf32, #tpu.memory_space<vmem>>, vector<1x8xf32>
    %cst_30 = arith.constant dense<0.000000e+00> : vector<16x8xf32>
    %47 = tpu.matmul %0, %45, %cst_30 {dimension_numbers = #tpu.dot_dimension_numbers<[1], [1], [0], [0], [0, 0, 1, 0], [], []>} : vector<16x32xf32>, vector<8x32xf32>, vector<16x8xf32> -> vector<16x8xf32>
    %48 = vector.broadcast %46 : vector<1x8xf32> to vector<16x8xf32>
    %49 = arith.addf %47, %48 : vector<16x8xf32>
    %c72 = arith.constant 72 : index
    %c0_31 = arith.constant 0 : index
    %50 = vector.load %arg2[%c72, %c0_31] : memref<128x32xf32, #tpu.memory_space<vmem>>, vector<8x32xf32>
    %c9 = arith.constant 9 : index
    %c0_32 = arith.constant 0 : index
    %51 = vector.load %arg3[%c9, %c0_32] : memref<12x8xf32, #tpu.memory_space<vmem>>, vector<1x8xf32>
    %cst_33 = arith.constant dense<0.000000e+00> : vector<16x8xf32>
    %52 = tpu.matmul %0, %50, %cst_33 {dimension_numbers = #tpu.dot_dimension_numbers<[1], [1], [0], [0], [0, 0, 1, 0], [], []>} : vector<16x32xf32>, vector<8x32xf32>, vector<16x8xf32> -> vector<16x8xf32>
    %53 = vector.broadcast %51 : vector<1x8xf32> to vector<16x8xf32>
    %54 = arith.addf %52, %53 : vector<16x8xf32>
    %c80 = arith.constant 80 : index
    %c0_34 = arith.constant 0 : index
    %55 = vector.load %arg2[%c80, %c0_34] : memref<128x32xf32, #tpu.memory_space<vmem>>, vector<8x32xf32>
    %c10 = arith.constant 10 : index
    %c0_35 = arith.constant 0 : index
    %56 = vector.load %arg3[%c10, %c0_35] : memref<12x8xf32, #tpu.memory_space<vmem>>, vector<1x8xf32>
    %cst_36 = arith.constant dense<0.000000e+00> : vector<16x8xf32>
    %57 = tpu.matmul %0, %55, %cst_36 {dimension_numbers = #tpu.dot_dimension_numbers<[1], [1], [0], [0], [0, 0, 1, 0], [], []>} : vector<16x32xf32>, vector<8x32xf32>, vector<16x8xf32> -> vector<16x8xf32>
    %58 = vector.broadcast %56 : vector<1x8xf32> to vector<16x8xf32>
    %59 = arith.addf %57, %58 : vector<16x8xf32>
    %c88 = arith.constant 88 : index
    %c0_37 = arith.constant 0 : index
    %60 = vector.load %arg2[%c88, %c0_37] : memref<128x32xf32, #tpu.memory_space<vmem>>, vector<8x32xf32>
    %c11 = arith.constant 11 : index
    %c0_38 = arith.constant 0 : index
    %61 = vector.load %arg3[%c11, %c0_38] : memref<12x8xf32, #tpu.memory_space<vmem>>, vector<1x8xf32>
    %cst_39 = arith.constant dense<0.000000e+00> : vector<16x8xf32>
    %62 = tpu.matmul %0, %60, %cst_39 {dimension_numbers = #tpu.dot_dimension_numbers<[1], [1], [0], [0], [0, 0, 1, 0], [], []>} : vector<16x32xf32>, vector<8x32xf32>, vector<16x8xf32> -> vector<16x8xf32>
    %63 = vector.broadcast %61 : vector<1x8xf32> to vector<16x8xf32>
    %64 = arith.addf %62, %63 : vector<16x8xf32>
    %65 = tpu.concatenate %49, %54, %59, %64 in 0 : vector<16x8xf32>, vector<16x8xf32>, vector<16x8xf32>, vector<16x8xf32> -> vector<64x8xf32>
    %cst_40 = arith.constant dense<0.000000e+00> : vector<64x64xf32>
    %66 = tpu.matmul %23, %44, %cst_40 {dimension_numbers = #tpu.dot_dimension_numbers<[1], [1], [0], [0], [0, 0, 1, 0], [], []>} : vector<64x8xf32>, vector<64x8xf32>, vector<64x64xf32> -> vector<64x64xf32>
    %c0_41 = arith.constant 0 : index
    %c0_42 = arith.constant 0 : index
    %67 = vector.load %arg5[%c0_41, %c0_42] : memref<64x64xf32, #tpu.memory_space<vmem>>, vector<64x64xf32>
    %68 = arith.addf %66, %67 : vector<64x64xf32>
    %cst_43 = arith.constant dense<0xFF800000> : vector<64xf32>
    %69 = vector.multi_reduction <maximumf>, %68, %cst_43 [1] : vector<64x64xf32> to vector<64xf32>
    %70 = vector.shape_cast %69 : vector<64xf32> to vector<64x1xf32>
    %71 = vector.broadcast %70 : vector<64x1xf32> to vector<64x64xf32>
    %72 = arith.subf %68, %71 : vector<64x64xf32>
    %73 = math.exp %72 : vector<64x64xf32>
    %cst_44 = arith.constant dense<0.000000e+00> : vector<64xf32>
    %74 = vector.multi_reduction <add>, %73, %cst_44 [1] : vector<64x64xf32> to vector<64xf32>
    %75 = vector.shape_cast %74 : vector<64xf32> to vector<64x1xf32>
    %76 = tpu.reciprocal %75 : vector<64x1xf32> -> vector<64x1xf32>
    %77 = vector.broadcast %76 : vector<64x1xf32> to vector<64x64xf32>
    %78 = arith.mulf %73, %77 : vector<64x64xf32>
    %cst_45 = arith.constant dense<0.000000e+00> : vector<64x8xf32>
    %79 = tpu.matmul %78, %65, %cst_45 {dimension_numbers = #tpu.dot_dimension_numbers<[1], [0], [0], [1], [0, 0, 1, 1], [], []>} : vector<64x64xf32>, vector<64x8xf32>, vector<64x8xf32> -> vector<64x8xf32>
    %80 = vector.extract_strided_slice %79 {offsets = [0, 0], sizes = [16, 8], strides = [1, 1]} : vector<64x8xf32> to vector<16x8xf32>
    %c96 = arith.constant 96 : index
    %c0_46 = arith.constant 0 : index
    %81 = vector.load %arg2[%c96, %c0_46] : memref<128x32xf32, #tpu.memory_space<vmem>>, vector<8x32xf32>
    %cst_47 = arith.constant dense<0.000000e+00> : vector<16x32xf32>
    %82 = tpu.matmul %80, %81, %cst_47 {dimension_numbers = #tpu.dot_dimension_numbers<[1], [0], [0], [1], [0, 0, 1, 1], [], []>} : vector<16x8xf32>, vector<8x32xf32>, vector<16x32xf32> -> vector<16x32xf32>
    %83 = vector.extract_strided_slice %79 {offsets = [16, 0], sizes = [16, 8], strides = [1, 1]} : vector<64x8xf32> to vector<16x8xf32>
    %c104 = arith.constant 104 : index
    %c0_48 = arith.constant 0 : index
    %84 = vector.load %arg2[%c104, %c0_48] : memref<128x32xf32, #tpu.memory_space<vmem>>, vector<8x32xf32>
    %cst_49 = arith.constant dense<0.000000e+00> : vector<16x32xf32>
    %85 = tpu.matmul %83, %84, %cst_49 {dimension_numbers = #tpu.dot_dimension_numbers<[1], [0], [0], [1], [0, 0, 1, 1], [], []>} : vector<16x8xf32>, vector<8x32xf32>, vector<16x32xf32> -> vector<16x32xf32>
    %86 = arith.addf %82, %85 : vector<16x32xf32>
    %87 = vector.extract_strided_slice %79 {offsets = [32, 0], sizes = [16, 8], strides = [1, 1]} : vector<64x8xf32> to vector<16x8xf32>
    %c112 = arith.constant 112 : index
    %c0_50 = arith.constant 0 : index
    %88 = vector.load %arg2[%c112, %c0_50] : memref<128x32xf32, #tpu.memory_space<vmem>>, vector<8x32xf32>
    %cst_51 = arith.constant dense<0.000000e+00> : vector<16x32xf32>
    %89 = tpu.matmul %87, %88, %cst_51 {dimension_numbers = #tpu.dot_dimension_numbers<[1], [0], [0], [1], [0, 0, 1, 1], [], []>} : vector<16x8xf32>, vector<8x32xf32>, vector<16x32xf32> -> vector<16x32xf32>
    %90 = arith.addf %86, %89 : vector<16x32xf32>
    %91 = vector.extract_strided_slice %79 {offsets = [48, 0], sizes = [16, 8], strides = [1, 1]} : vector<64x8xf32> to vector<16x8xf32>
    %c120 = arith.constant 120 : index
    %c0_52 = arith.constant 0 : index
    %92 = vector.load %arg2[%c120, %c0_52] : memref<128x32xf32, #tpu.memory_space<vmem>>, vector<8x32xf32>
    %cst_53 = arith.constant dense<0.000000e+00> : vector<16x32xf32>
    %93 = tpu.matmul %91, %92, %cst_53 {dimension_numbers = #tpu.dot_dimension_numbers<[1], [0], [0], [1], [0, 0, 1, 1], [], []>} : vector<16x8xf32>, vector<8x32xf32>, vector<16x32xf32> -> vector<16x32xf32>
    %94 = arith.addf %90, %93 : vector<16x32xf32>
    %c0_54 = arith.constant 0 : index
    %c0_55 = arith.constant 0 : index
    %95 = vector.load %arg4[%c0_54, %c0_55] : memref<3x32xf32, #tpu.memory_space<vmem>>, vector<1x32xf32>
    %96 = vector.broadcast %95 : vector<1x32xf32> to vector<16x32xf32>
    %97 = arith.addf %94, %96 : vector<16x32xf32>
    %cst_56 = arith.constant dense<0.000000e+00> : vector<16xf32>
    %98 = vector.multi_reduction <add>, %97, %cst_56 [1] : vector<16x32xf32> to vector<16xf32>
    %99 = vector.shape_cast %98 : vector<16xf32> to vector<16x1xf32>
    %cst_57 = arith.constant 3.200000e+01 : f32
    %100 = vector.broadcast %cst_57 : f32 to vector<16x1xf32>
    %101 = arith.divf %99, %100 : vector<16x1xf32>
    %102 = vector.broadcast %101 : vector<16x1xf32> to vector<16x32xf32>
    %103 = arith.subf %97, %102 : vector<16x32xf32>
    %104 = arith.mulf %103, %103 : vector<16x32xf32>
    %cst_58 = arith.constant dense<0.000000e+00> : vector<16xf32>
    %105 = vector.multi_reduction <add>, %104, %cst_58 [1] : vector<16x32xf32> to vector<16xf32>
    %106 = vector.shape_cast %105 : vector<16xf32> to vector<16x1xf32>
    %cst_59 = arith.constant 3.200000e+01 : f32
    %107 = vector.broadcast %cst_59 : f32 to vector<16x1xf32>
    %108 = arith.divf %106, %107 : vector<16x1xf32>
    %109 = vector.broadcast %101 : vector<16x1xf32> to vector<16x32xf32>
    %110 = arith.subf %97, %109 : vector<16x32xf32>
    %cst_60 = arith.constant 9.99999974E-6 : f32
    %111 = vector.broadcast %cst_60 : f32 to vector<16x1xf32>
    %112 = arith.addf %108, %111 : vector<16x1xf32>
    %113 = math.rsqrt %112 : vector<16x1xf32>
    %114 = vector.broadcast %113 : vector<16x1xf32> to vector<16x32xf32>
    %115 = arith.mulf %110, %114 : vector<16x32xf32>
    %c1_61 = arith.constant 1 : index
    %c0_62 = arith.constant 0 : index
    %116 = vector.load %arg4[%c1_61, %c0_62] : memref<3x32xf32, #tpu.memory_space<vmem>>, vector<1x32xf32>
    %117 = vector.broadcast %116 : vector<1x32xf32> to vector<16x32xf32>
    %118 = arith.mulf %115, %117 : vector<16x32xf32>
    %c2_63 = arith.constant 2 : index
    %c0_64 = arith.constant 0 : index
    %119 = vector.load %arg4[%c2_63, %c0_64] : memref<3x32xf32, #tpu.memory_space<vmem>>, vector<1x32xf32>
    %120 = vector.broadcast %119 : vector<1x32xf32> to vector<16x32xf32>
    %121 = arith.addf %118, %120 : vector<16x32xf32>
    %c0_65 = arith.constant 0 : index
    %c0_66 = arith.constant 0 : index
    %122 = vector.load %arg6[%c0_65, %c0_66] : memref<16x32xf32, #tpu.memory_space<vmem>>, vector<16x32xf32>
    tpu.vector_store %arg6[%c0_65, %c0_66], %121 {strides = array<i32>} : memref<16x32xf32, #tpu.memory_space<vmem>>, vector<16x32xf32>,
    return
  }
  func.func @transform_0(%arg0: i32) -> (i32, i32) {
    %c0_i32 = arith.constant 0 : i32
    %c0_i32_0 = arith.constant 0 : i32
    %c0_i32_1 = arith.constant 0 : i32
    return %c0_i32, %c0_i32_0 : i32, i32
  }
  func.func @transform_1(%arg0: i32) -> (i32, i32) {
    %c0_i32 = arith.constant 0 : i32
    %c0_i32_0 = arith.constant 0 : i32
    %c0_i32_1 = arith.constant 0 : i32
    return %c0_i32, %c0_i32_0 : i32, i32
  }
  func.func @transform_2(%arg0: i32) -> (i32, i32) {
    %c0_i32 = arith.constant 0 : i32
    %c0_i32_0 = arith.constant 0 : i32
    %c0_i32_1 = arith.constant 0 : i32
    return %c0_i32, %c0_i32_0 : i32, i32
  }
  func.func @transform_3(%arg0: i32) -> (i32, i32) {
    %c0_i32 = arith.constant 0 : i32
    %c0_i32_0 = arith.constant 0 : i32
    %c0_i32_1 = arith.constant 0 : i32
    return %c0_i32, %c0_i32_0 : i32, i32
  }
  func.func @transform_4(%arg0: i32) -> (i32, i32) {
    %c0_i32 = arith.constant 0 : i32
    %c0_i32_0 = arith.constant 0 : i32
    %c0_i32_1 = arith.constant 0 : i32
    return %c0_i32, %c0_i32_0 : i32, i32
  }
  func.func @transform_5(%arg0: i32) -> (i32, i32) {
    %c0_i32 = arith.constant 0 : i32
    %c0_i32_0 = arith.constant 0 : i32
    %c0_i32_1 = arith.constant 0 : i32
    return %c0_i32, %c0_i32_0 : i32, i32
  }
}

</mosaic_0001>

<bundles_post_ra>
// kernel: multi_head_attention_pallas.1
= control target key start
LH: loop header
LB: loop body
LE: loop exit
PB: predicated region body
PF: predicated region fallthrough
CT: control target
= control target key end

     0   :  { %vm26_vm0 = vcmask 261120   ;;  %s1390_s0 = inlined_call_operand.vmem [shape: f32[16,32], index: 0, kind: input, shape index: {}]   ;;  %s1391_s1 = inlined_call_operand.vmem [shape: f32[128,32], index: 1, kind: input, shape index: {}]   ;;  %s1392_s2 = inlined_call_operand.vmem [shape: f32[12,8], index: 2, kind: input, shape index: {}]   ;;  %s1393_s3 = inlined_call_operand.vmem [shape: f32[3,32], index: 3, kind: input, shape index: {}]   ;;  %s1394_s4 = inlined_call_operand.vmem [shape: f32[64,64], index: 4, kind: input, shape index: {}]   ;;  %s1395_s5 = inlined_call_operand.hbm [shape: f32[16,32], index: 5, kind: output, shape index: {}]  }
   0x1   :  { %v117_v0 = vld [vmem:[%s1391_s1 + $0x18] sm:$0xff]  ;;  %v154_v1 = vld [vmem:[%s1391_s1 + $0x20] sm:$0xff]  ;;  %v88_v4 = vld [vmem:[%s1391_s1 + $0x10] sm:$0xff] }
   0x2   :  { %958 = vmatpush.xpose.msk.msra.mxu3 %vm26_vm0, %v117_v0  ;;  %v21_v2 = vld [vmem:[%s1390_s0] sm:$0xff]  ;;  %v241_v5 = vld [vmem:[%s1391_s1 + $0x38] sm:$0xff]  ;;  %v212_v6 = vld [vmem:[%s1391_s1 + $0x30] sm:$0xff] }
   0x3   :  { %v23_v3 = vld [vmem:[%s1391_s1] sm:$0xff] }
   0x4   :  { %949 = vmatpush.xpose.msk.msra.mxu2 %vm26_vm0, %v23_v3 }
   0x5   :  { %959 = vmatmul.msk.f32.vlgmr.msra.gmra.mxu3 %vm26_vm0, %v21_v2 }
   0x6   :  { %961 = vmatpush.xpose.msk.msrb.mxu3 %vm26_vm0, %v154_v1 }
   0x7   :  { %950 = vmatmul.msk.f32.vlgmr.msra.gmra.mxu2 %vm26_vm0, %v21_v2 }
   0x8   :  { %955 = vmatpush.xpose.msk.msrb.mxu2 %vm26_vm0, %v88_v4 }
   0xa   :  { %970 = vmatpush.xpose.msk.msra.mxu3 %vm26_vm0, %v241_v5 }
   0xc   :  { %967 = vmatpush.xpose.msk.msra.mxu2 %vm26_vm0, %v212_v6 }
   0xd   :  { %10 = vsyncpa [#allocation3], 0  ;;  %v22_v7 = vld [vmem:[%s1390_s0 + $0x8] sm:$0xff]  ;;  %v357_v10 = vld [vmem:[%s1391_s1 + $0x58] sm:$0xff]  ;;  %vm394_vm1 = vcmask 64512   ;;  %vm484_vm2 = vcmask 523264  }
   0xe   :  { %960 = vmatmul.msk.f32.gmra.mxu3 %vm26_vm0, %v22_v7  ;;  %v59_v8 = vld [vmem:[%s1391_s1 + $0x8] sm:$0xff]  ;;  %v328_v11 = vld [vmem:[%s1391_s1 + $0x50] sm:$0xff]  ;;  %v270_v17 = vld [vmem:[%s1391_s1 + $0x40] sm:$0xff]  ;;  %s1102_s19 = smov [#allocation2]   ;;  %s937_s22 = sshll.u32 %s1395_s5, 4  ;;  %s938_s22 = int_to_ptr.hbm [resolvable:$true] %s937_s22 }
   0xf   :  { %v183_v9 = vld [vmem:[%s1391_s1 + $0x28] sm:$0xff]  ;;  %951 = vmatmul.msk.f32.gmra.mxu2 %vm26_vm0, %v22_v7  ;;  %1017 = vmatpush.xpose.msk.msra.mxu1 %vm26_vm0, %v59_v8  ;;  %v1026_v25 = vld [vmem:[%s1392_s2 + $0x7] ss:$0 sm:$0xff]  ;;  %v1028_v31 = vld [vmem:[%s1392_s2 + $0x6] ss:$0 sm:$0xff]  ;;  %s1104_s23 = smov 8  }
  0x10   :  { %952 = vmatpush.xpose.msk.msra.mxu0 %vm26_vm0, %v59_v8  ;;  %v299_v15 = vld [vmem:[%s1391_s1 + $0x48] sm:$0xff]  ;;  %v1029_v35 = vld [vmem:[%s1392_s2 + $0x5] ss:$0 sm:$0xff]  ;;  %v1024_v38 = vld [vmem:[%s1392_s2 + $0x4] ss:$0 sm:$0xff] }
  0x11   :  { %v1023_v39 = vld [vmem:[%s1392_s2] ss:$0 sm:$0xff]  ;;  %v1027_v47 = vld [vmem:[%s1392_s2 + $0x1] ss:$0 sm:$0xff]  ;;  %v1025_v51 = vld [vmem:[%s1392_s2 + $0x2] ss:$0 sm:$0xff] }
  0x12   :  { %954 = vmatmul.msk.f32.vlgmr.msra.gmra.mxu1 %vm26_vm0, %v22_v7  ;;  %v1022_v56 = vld [vmem:[%s1392_s2 + $0x3] ss:$0 sm:$0xff]  ;;  %v1030_v0 = vld [vmem:[%s1392_s2 + $0xb] ss:$0 sm:$0xff]  ;;  %v1031_v1 = vld [vmem:[%s1392_s2 + $0xa] ss:$0 sm:$0xff] }
  0x13   :  { %964 = vmatpush.xpose.msk.msrb.mxu1 %vm26_vm0, %v183_v9  ;;  %953 = vmatmul.msk.f32.vlgmr.msra.gmra.mxu0 %vm26_vm0, %v21_v2 }
  0x14   :  { %973 = vmatpush.xpose.msk.msrb.mxu0 %vm26_vm0, %v270_v17 }
  0x16   :  { %962 = vmatmul.msk.f32.vlgmr.msrb.gmra.mxu3 %vm26_vm0, %v21_v2 }
  0x17   :  { %956 = vmatmul.msk.f32.vlgmr.msrb.gmra.mxu2 %vm26_vm0, %v21_v2  ;;  %982 = vmatpush.xpose.msk.msrb.mxu3 %vm26_vm0, %v357_v10  ;;  %v1032_v10 = vld [vmem:[%s1392_s2 + $0x9] ss:$0 sm:$0xff] }
  0x18   :  { %979 = vmatpush.xpose.msk.msrb.mxu2 %vm26_vm0, %v328_v11  ;;  %976 = vmatpush.xpose.msk.msra.mxu1 %vm26_vm0, %v299_v15  ;;  %v1033_v11 = vld [vmem:[%s1392_s2 + $0x8] ss:$0 sm:$0xff]  ;;  %s935_s2 = sshll.u32 %s1102_s19, 4  ;;  %s936_s2 = int_to_ptr.vmem [resolvable:$true] %s935_s2 }
  0x1a   :  { %965 = vmatmul.msk.f32.vlgmr.msrb.gmra.mxu1 %vm26_vm0, %v21_v2 }
  0x1b   :  { %974 = vmatmul.msk.f32.vlgmr.msrb.gmra.mxu0 %vm26_vm0, %v21_v2 }
  0x1e   :  { %963 = vmatmul.msk.f32.gmra.mxu3 %vm26_vm0, %v22_v7 }
  0x1f   :  { %957 = vmatmul.msk.f32.gmra.mxu2 %vm26_vm0, %v22_v7 }
  0x22   :  { %966 = vmatmul.msk.f32.gmra.mxu1 %vm26_vm0, %v22_v7 }
  0x23   :  { %975 = vmatmul.msk.f32.gmra.mxu0 %vm26_vm0, %v22_v7 }
  0x26   :  { %971 = vmatmul.msk.f32.vlgmr.msra.gmra.mxu3 %vm26_vm0, %v21_v2 }
  0x27   :  { %968 = vmatmul.msk.f32.vlgmr.msra.gmra.mxu2 %vm26_vm0, %v21_v2 }
  0x2a   :  { %977 = vmatmul.msk.f32.vlgmr.msra.gmra.mxu1 %vm26_vm0, %v21_v2 }
  0x2e   :  { %972 = vmatmul.msk.f32.gmra.mxu3 %vm26_vm0, %v22_v7 }
  0x2f   :  { %969 = vmatmul.msk.f32.gmra.mxu2 %vm26_vm0, %v22_v7 }
  0x32   :  { %978 = vmatmul.msk.f32.gmra.mxu1 %vm26_vm0, %v22_v7 }
  0x36   :  { %983 = vmatmul.msk.f32.vlgmr.msrb.gmra.mxu3 %vm26_vm0, %v21_v2 }
  0x37   :  { %980 = vmatmul.msk.f32.vlgmr.msrb.gmra.mxu2 %vm26_vm0, %v21_v2 }
  0x3e   :  { %984 = vmatmul.msk.f32.gmra.mxu3 %vm26_vm0, %v22_v7 }
  0x3f   :  { %981 = vmatmul.msk.f32.gmra.mxu2 %vm26_vm0, %v22_v7 }
  0x88   :  { %v1200_v12 = vpop.f32.mrf.mxu3 }
  0x89   :  { %v141_v58 = vadd.f32 %v1022_v56, %v1200_v12 }
  0x8a   :  { %v53_v13 = vpop.f32.mrf.mxu2 }
  0x8b   :  { %v54_v41 = vadd.f32 %v1023_v39, %v53_v13  ;;  %v152_v59 = vmul.f32 2.0, %v141_v58 }
  0x8d   :  { %v146_v43 = vmul.f32 2.0, %v54_v41 }
  0x8f   :  { %v85_v23 = vpop.f32.mrf.mxu1 }
  0x90   :  { %v82_v45 = vpop.f32.mrf.mxu0  ;;  %v86_v50 = vadd.f32 %v1027_v47, %v85_v23 }
  0x91   :  { %v1204_v14 = vpop.f32.mrf.mxu3  ;;  %v83_v48 = vadd.f32 %v1027_v47, %v82_v45 }
  0x92   :  { %v56_v16 = vpop.f32.mrf.mxu2  ;;  %v149_v52 = vmul.f32 2.0, %v86_v50  ;;  %v144_v60 = vadd.f32 %v1022_v56, %v1204_v14 }
  0x93   :  { %v57_v44 = vadd.f32 %v1023_v39, %v56_v16  ;;  %v148_v49 = vmul.f32 2.0, %v83_v48 }
  0x94   :  { %v153_v61 = vmul.f32 2.0, %v144_v60 }
  0x95   :  { %v147_v46 = vmul.f32 2.0, %v57_v44 }
  0x97   :  { %v206_v28 = vpop.f32.mrf.mxu1 }
  0x98   :  { %v207_v37 = vadd.f32 %v1029_v35, %v206_v28  ;;  %v293_v7 = vpop.f32.mrf.mxu0 }
  0x99   :  { %v177_v18 = vpop.f32.mrf.mxu3  ;;  %v294_v17 = vadd.f32 %v1033_v11, %v293_v7 }
  0x9a   :  { %v111_v19 = vpop.f32.mrf.mxu2  ;;  %v178_v42 = vadd.f32 %v1024_v38, %v177_v18  ;;  %v386_v18 = vld [vmem:[%s1394_s4] sm:$0xff] }
  0x9b   :  { %v112_v53 = vadd.f32 %v1025_v51, %v111_v19 }
  0x9d   :  { %v150_v54 = vmul.f32 2.0, %v112_v53 }
  0x9f   :  { %v209_v33 = vpop.f32.mrf.mxu1 }
  0xa0   :  { %v210_v36 = vadd.f32 %v1029_v35, %v209_v33  ;;  %v296_v15 = vpop.f32.mrf.mxu0 }
  0xa1   :  { %v180_v20 = vpop.f32.mrf.mxu3  ;;  %v297_v16 = vadd.f32 %v1033_v11, %v296_v15 }
  0xa2   :  { %v114_v21 = vpop.f32.mrf.mxu2  ;;  %v181_v40 = vadd.f32 %v1024_v38, %v180_v20  ;;  %v391_v38 = vld [vmem:[%s1394_s4 + $0x28] sm:$0xff] }
  0xa3   :  { %v115_v55 = vadd.f32 %v1025_v51, %v114_v21 }
  0xa5   :  { %v151_v57 = vmul.f32 2.0, %v115_v55 }
  0xa7   :  { %v322_v5 = vpop.f32.mrf.mxu1 }
  0xa8   :  { %v323_v13 = vadd.f32 %v1032_v10, %v322_v5 }
  0xa9   :  { %v264_v22 = vpop.f32.mrf.mxu3 }
  0xaa   :  { %v235_v24 = vpop.f32.mrf.mxu2  ;;  %v265_v30 = vadd.f32 %v1026_v25, %v264_v22  ;;  %v387_v22 = vld [vmem:[%s1394_s4 + $0x8] sm:$0xff] }
  0xab   :  { %v236_v34 = vadd.f32 %v1028_v31, %v235_v24 }
  0xaf   :  { %v325_v12 = vpop.f32.mrf.mxu1 }
  0xb0   :  { %v326_v14 = vadd.f32 %v1032_v10, %v325_v12 }
  0xb1   :  { %v267_v26 = vpop.f32.mrf.mxu3 }
  0xb2   :  { %v268_v27 = vadd.f32 %v1026_v25, %v267_v26  ;;  %v238_v29 = vpop.f32.mrf.mxu2  ;;  %v388_v26 = vld [vmem:[%s1394_s4 + $0x10] sm:$0xff] }
  0xb3   :  { %v239_v32 = vadd.f32 %v1028_v31, %v238_v29 }
  0xb4   :  { %985 = vmatpush.xpose.msk.msra.mxu0 %vm394_vm1, %v268_v27 }
  0xb8   :  { %986 = vmatpush.xpose.msk.msra.mxu0 %vm394_vm1, %v265_v30  ;;  %v389_v30 = vld [vmem:[%s1394_s4 + $0x18] sm:$0xff] }
  0xb9   :  { %v380_v62 = vpop.f32.mrf.mxu3 }
  0xba   :  { %v351_v63 = vpop.f32.mrf.mxu2  ;;  %v381_v4 = vadd.f32 %v1030_v0, %v380_v62 }
  0xbb   :  { %v352_v9 = vadd.f32 %v1031_v1, %v351_v63 }
  0xbc   :  { %987 = vmatpush.xpose.msk.msra.mxu0 %vm394_vm1, %v239_v32 }
  0xc0   :  { %988 = vmatpush.xpose.msk.msra.mxu0 %vm394_vm1, %v236_v34  ;;  %v390_v34 = vld [vmem:[%s1394_s4 + $0x20] sm:$0xff] }
  0xc1   :  { %v383_v2 = vpop.f32.mrf.mxu3 }
  0xc2   :  { %v354_v3 = vpop.f32.mrf.mxu2  ;;  %v384_v6 = vadd.f32 %v1030_v0, %v383_v2 }
  0xc3   :  { %v355_v8 = vadd.f32 %v1031_v1, %v354_v3 }
  0xc4   :  { %989 = vmatpush.xpose.msk.msra.mxu0 %vm394_vm1, %v210_v36  ;;  %709 = vmatpush.msrb.mxu1 %v384_v6 }
  0xc6   :  { %710 = vmatpush.msrb.mxu1 %v381_v4 }
  0xc8   :  { %990 = vmatpush.xpose.msk.msra.mxu0 %vm394_vm1, %v207_v37  ;;  %711 = vmatpush.msrb.mxu1 %v355_v8 }
  0xca   :  { %712 = vmatpush.msrb.mxu1 %v352_v9 }
  0xcc   :  { %991 = vmatpush.xpose.msk.msra.mxu0 %vm394_vm1, %v181_v40  ;;  %713 = vmatpush.msrb.mxu1 %v326_v14 }
  0xce   :  { %714 = vmatpush.msrb.mxu1 %v323_v13 }
  0xd0   :  { %992 = vmatpush.xpose.msk.msra.mxu0 %vm394_vm1, %v178_v42  ;;  %715 = vmatpush.msrb.mxu1 %v297_v16  ;;  %v392_v42 = vld [vmem:[%s1394_s4 + $0x30] sm:$0xff] }
  0xd2   :  { %716 = vmatpush.msrb.mxu1 %v294_v17 }
  0xd3   :  { %993 = vmatmul.msk.f32.vlgmr.msra.gmra.mxu0 %vm394_vm1, %v146_v43 }
  0xdb   :  { %994 = vmatmul.msk.f32.gmra.mxu0 %vm394_vm1, %v147_v46  ;;  %v393_v46 = vld [vmem:[%s1394_s4 + $0x38] sm:$0xff] }
  0xe3   :  { %995 = vmatmul.msk.f32.gmra.mxu0 %vm394_vm1, %v148_v49 }
  0xeb   :  { %996 = vmatmul.msk.f32.gmra.mxu0 %vm394_vm1, %v149_v52 }
  0xf3   :  { %997 = vmatmul.msk.f32.gmra.mxu0 %vm394_vm1, %v150_v54 }
  0xfb   :  { %998 = vmatmul.msk.f32.gmra.mxu0 %vm394_vm1, %v151_v57 }
 0x103   :  { %999 = vmatmul.msk.f32.gmra.mxu0 %vm394_vm1, %v152_v59 }
 0x10b   :  { %1000 = vmatmul.msk.f32.gmra.mxu0 %vm394_vm1, %v153_v61 }
 0x150   :  { %v460_v19 = vpop.f32.mrf.mxu0 }
 0x151   :  { %v461_v20 = vadd.f32 %v460_v19, %v386_v18 }
 0x153   :  { %v485_v21 = vsel %vm484_vm2, %v461_v20, -inf }
 0x154   :  { %486 = vmax.xlane.f32.xlu0 %v485_v21 }
 0x158   :  { %v463_v23 = vpop.f32.mrf.mxu0 }
 0x159   :  { %v464_v24 = vadd.f32 %v463_v23, %v387_v22 }
 0x15b   :  { %v488_v25 = vsel %vm484_vm2, %v464_v24, -inf }
 0x15c   :  { %489 = vmax.xlane.f32.xlu0 %v488_v25 }
 0x160   :  { %v466_v27 = vpop.f32.mrf.mxu0 }
 0x161   :  { %v467_v28 = vadd.f32 %v466_v27, %v388_v26 }
 0x163   :  { %v491_v29 = vsel %vm484_vm2, %v467_v28, -inf }
 0x164   :  { %492 = vmax.xlane.f32.xlu1 %v491_v29 }
 0x168   :  { %v469_v31 = vpop.f32.mrf.mxu0 }
 0x169   :  { %v470_v32 = vadd.f32 %v469_v31, %v389_v30 }
 0x16b   :  { %v494_v33 = vsel %vm484_vm2, %v470_v32, -inf }
 0x16c   :  { %495 = vmax.xlane.f32.xlu1 %v494_v33 }
 0x170   :  { %v472_v35 = vpop.f32.mrf.mxu0 }
 0x171   :  { %v473_v36 = vadd.f32 %v472_v35, %v390_v34 }
 0x173   :  { %v497_v37 = vsel %vm484_vm2, %v473_v36, -inf }
 0x174   :  { %498 = vmax.xlane.f32.xlu2 %v497_v37 }
 0x178   :  { %v475_v39 = vpop.f32.mrf.mxu0 }
 0x179   :  { %v476_v40 = vadd.f32 %v475_v39, %v391_v38 }
 0x17b   :  { %v500_v41 = vsel %vm484_vm2, %v476_v40, -inf }
 0x17c   :  { %501 = vmax.xlane.f32.xlu2 %v500_v41 }
 0x180   :  { %v478_v43 = vpop.f32.mrf.mxu0 }
 0x181   :  { %v479_v44 = vadd.f32 %v478_v43, %v392_v42 }
 0x183   :  { %v503_v45 = vsel %vm484_vm2, %v479_v44, -inf }
 0x184   :  { %504 = vmax.xlane.f32.xlu0 %v503_v45 }
 0x188   :  { %v481_v47 = vpop.f32.mrf.mxu0 }
 0x189   :  { %v482_v48 = vadd.f32 %v481_v47, %v393_v46 }
 0x18b   :  { %v506_v49 = vsel %vm484_vm2, %v482_v48, -inf }
 0x18c   :  { %507 = vmax.xlane.f32.xlu2 %v506_v49 }
 0x1c7   :  { %v487_v50 = vpop.xlane.xlu0 %486 }
 0x1c8   :  { %v509_v51 = vsub.f32 %v461_v20, %v487_v50 }
 0x1ca   :  { %v517_v52 = vmul.f32 1.442695, %v509_v51 }
 0x1cc   :  { %1037 = vpow2.f32 %v517_v52 }
 0x1cf   :  { %v490_v53 = vpop.xlane.xlu0 %489 }
 0x1d0   :  { %v510_v54 = vsub.f32 %v464_v24, %v490_v53 }
 0x1d2   :  { %v1304_v55 = vpop.eup %1037  ;;  %v519_v56 = vmul.f32 1.442695, %v510_v54 }
 0x1d3   :  { %v533_v57 = vsel %vm484_vm2, %v1304_v55, 0.0 }
 0x1d4   :  { %1039 = vpow2.f32 %v519_v56  ;;  %534 = vadd.xlane.f32.xlu1 %v533_v57 }
 0x1d7   :  { %v493_v58 = vpop.xlane.xlu1 %492 }
 0x1d8   :  { %v511_v59 = vsub.f32 %v467_v28, %v493_v58 }
 0x1da   :  { %v1308_v60 = vpop.eup %1039  ;;  %v521_v61 = vmul.f32 1.442695, %v511_v59 }
 0x1db   :  { %v536_v62 = vsel %vm484_vm2, %v1308_v60, 0.0 }
 0x1dc   :  { %1041 = vpow2.f32 %v521_v61  ;;  %537 = vadd.xlane.f32.xlu0 %v536_v62 }
 0x1df   :  { %v496_v63 = vpop.xlane.xlu1 %495 }
 0x1e0   :  { %v512_v0 = vsub.f32 %v470_v32, %v496_v63 }
 0x1e2   :  { %v1312_v1 = vpop.eup %1041  ;;  %v523_v2 = vmul.f32 1.442695, %v512_v0 }
 0x1e3   :  { %v539_v3 = vsel %vm484_vm2, %v1312_v1, 0.0 }
 0x1e4   :  { %1043 = vpow2.f32 %v523_v2  ;;  %540 = vadd.xlane.f32.xlu1 %v539_v3 }
 0x1e7   :  { %v499_v4 = vpop.xlane.xlu2 %498 }
 0x1e8   :  { %v513_v5 = vsub.f32 %v473_v36, %v499_v4 }
 0x1ea   :  { %v1316_v6 = vpop.eup %1043  ;;  %v525_v7 = vmul.f32 1.442695, %v513_v5 }
 0x1eb   :  { %v542_v8 = vsel %vm484_vm2, %v1316_v6, 0.0 }
 0x1ec   :  { %1045 = vpow2.f32 %v525_v7  ;;  %543 = vadd.xlane.f32.xlu2 %v542_v8 }
 0x1ef   :  { %v502_v9 = vpop.xlane.xlu2 %501 }
 0x1f0   :  { %v514_v10 = vsub.f32 %v476_v40, %v502_v9 }
 0x1f2   :  { %v1320_v11 = vpop.eup %1045  ;;  %v527_v12 = vmul.f32 1.442695, %v514_v10 }
 0x1f3   :  { %v545_v13 = vsel %vm484_vm2, %v1320_v11, 0.0 }
 0x1f4   :  { %1047 = vpow2.f32 %v527_v12  ;;  %546 = vadd.xlane.f32.xlu0 %v545_v13 }
 0x1f7   :  { %v505_v14 = vpop.xlane.xlu0 %504 }
 0x1f8   :  { %v515_v15 = vsub.f32 %v479_v44, %v505_v14 }
 0x1fa   :  { %v1324_v16 = vpop.eup %1047  ;;  %v529_v17 = vmul.f32 1.442695, %v515_v15 }
 0x1fb   :  { %v548_v18 = vsel %vm484_vm2, %v1324_v16, 0.0 }
 0x1fc   :  { %1049 = vpow2.f32 %v529_v17  ;;  %549 = vadd.xlane.f32.xlu1 %v548_v18 }
 0x1ff   :  { %v508_v19 = vpop.xlane.xlu2 %507 }
 0x200   :  { %v516_v20 = vsub.f32 %v482_v48, %v508_v19 }
 0x202   :  { %v1328_v21 = vpop.eup %1049  ;;  %v531_v22 = vmul.f32 1.442695, %v516_v20 }
 0x203   :  { %v551_v23 = vsel %vm484_vm2, %v1328_v21, 0.0 }
 0x204   :  { %1051 = vpow2.f32 %v531_v22  ;;  %552 = vadd.xlane.f32.xlu2 %v551_v23 }
 0x20a   :  { %v1332_v24 = vpop.eup %1051 }
 0x20b   :  { %v554_v25 = vsel %vm484_vm2, %v1332_v24, 0.0 }
 0x20c   :  { %555 = vadd.xlane.f32.xlu0 %v554_v25 }
 0x247   :  { %v535_v26 = vpop.xlane.xlu1 %534 }
 0x248   :  { %1053 = vrcp.f32 %v535_v26  ;;  %v568_v31 = vand.u32 2147483648, %v535_v26  ;;  %v566_v33 = vand.u32 2147483647, %v535_v26  ;;  %vm562_vm4 = vweird.f32 %v535_v26 }
 0x24a   :  { %v569_v36 = vor.u32 1.1754944e-38, %v568_v31  ;;  %vm567_vm6 = vcmp.eq.f32.partialorder %v566_v33, 8.507059e+37 }
 0x24e   :  { %v1054_v27 = vpop.eup %1053 }
 0x24f   :  { %v558_v28 = vmul.f32 %v1054_v27, %v535_v26  ;;  %v538_v29 = vpop.xlane.xlu0 %537  ;;  %vm563_vm3 = vweird.f32 %v1054_v27 }
 0x250   :  { %1055 = vrcp.f32 %v538_v29  ;;  %vm564_vm5 = vmor %vm562_vm4, %vm563_vm3  ;;  %v582_v43 = vand.u32 2147483648, %v538_v29  ;;  %v580_v45 = vand.u32 2147483647, %v538_v29  ;;  %vm576_vm8 = vweird.f32 %v538_v29 }
 0x251   :  { %v559_v30 = vsub.f32 1.0, %v558_v28 }
 0x252   :  { %v583_v48 = vor.u32 1.1754944e-38, %v582_v43  ;;  %vm581_vm10 = vcmp.eq.f32.partialorder %v580_v45, 8.507059e+37 }
 0x253   :  { %v560_v32 = vmul.f32 %v1054_v27, %v559_v30 }
 0x255   :  { %v561_v34 = vadd.f32 %v1054_v27, %v560_v32 }
 0x256   :  { %v1056_v35 = vpop.eup %1055 }
 0x257   :  { %v565_v37 = vsel %vm564_vm5, %v1054_v27, %v561_v34  ;;  %v572_v38 = vmul.f32 %v1056_v35, %v538_v29  ;;  %v541_v39 = vpop.xlane.xlu1 %540  ;;  %vm577_vm7 = vweird.f32 %v1056_v35 }
 0x258   :  { %v570_v40 = vsel %vm567_vm6, %v569_v36, %v565_v37  ;;  %1057 = vrcp.f32 %v541_v39  ;;  %vm578_vm9 = vmor %vm576_vm8, %vm577_vm7  ;;  %v594_v57 = vand.u32 2147483647, %v541_v39  ;;  %vm590_vm12 = vweird.f32 %v541_v39 }
 0x259   :  { %v573_v41 = vsub.f32 1.0, %v572_v38  ;;  %v669_v42 = vmul.f32 %v1304_v55, %v570_v40  ;;  %v596_v55 = vand.u32 2147483648, %v541_v39 }
 0x25a   :  { %vm595_vm14 = vcmp.eq.f32.partialorder %v594_v57, 8.507059e+37 }
 0x25b   :  { %v574_v44 = vmul.f32 %v1056_v35, %v573_v41  ;;  %1001 = vmatmul.msk.f32.vlgmr.msrb.gmra.mxu1 %vm484_vm2, %v669_v42  ;;  %v597_v61 = vor.u32 1.1754944e-38, %v596_v55 }
 0x25d   :  { %v575_v46 = vadd.f32 %v1056_v35, %v574_v44 }
 0x25e   :  { %v1058_v47 = vpop.eup %1057 }
 0x25f   :  { %v586_v49 = vmul.f32 %v1058_v47, %v541_v39  ;;  %v544_v50 = vpop.xlane.xlu2 %543  ;;  %v579_v51 = vsel %vm578_vm9, %v1056_v35, %v575_v46  ;;  %vm591_vm11 = vweird.f32 %v1058_v47 }
 0x260   :  { %1059 = vrcp.f32 %v544_v50  ;;  %v584_v52 = vsel %vm581_vm10, %v583_v48, %v579_v51  ;;  %vm592_vm13 = vmor %vm590_vm12, %vm591_vm11  ;;  %v610_v4 = vand.u32 2147483648, %v544_v50  ;;  %v608_v7 = vand.u32 2147483647, %v544_v50 }
 0x261   :  { %v587_v53 = vsub.f32 1.0, %v586_v49  ;;  %v670_v54 = vmul.f32 %v1308_v60, %v584_v52  ;;  %vm604_vm3 = vweird.f32 %v544_v50 }
 0x262   :  { %v611_v10 = vor.u32 1.1754944e-38, %v610_v4  ;;  %vm609_vm5 = vcmp.eq.f32.partialorder %v608_v7, 8.507059e+37 }
 0x263   :  { %v588_v56 = vmul.f32 %v1058_v47, %v587_v53  ;;  %1002 = vmatmul.msk.f32.gmra.mxu1 %vm484_vm2, %v670_v54 }
 0x265   :  { %v589_v58 = vadd.f32 %v1058_v47, %v588_v56 }
 0x266   :  { %v1060_v59 = vpop.eup %1059 }
 0x267   :  { %v600_v62 = vmul.f32 %v1060_v59, %v544_v50  ;;  %v547_v63 = vpop.xlane.xlu0 %546  ;;  %v593_v0 = vsel %vm592_vm13, %v1058_v47, %v589_v58  ;;  %vm605_vm15 = vweird.f32 %v1060_v59 }
 0x268   :  { %1061 = vrcp.f32 %v547_v63  ;;  %v598_v2 = vsel %vm595_vm14, %v597_v61, %v593_v0  ;;  %vm606_vm4 = vmor %vm604_vm3, %vm605_vm15  ;;  %v624_v18 = vand.u32 2147483648, %v547_v63  ;;  %v622_v20 = vand.u32 2147483647, %v547_v63  ;;  %v743_v61 = vld [vmem:[%s1391_s1 + $0x68] sm:$0xff] }
 0x269   :  { %v601_v3 = vsub.f32 1.0, %v600_v62  ;;  %v671_v60 = vmul.f32 %v1312_v1, %v598_v2  ;;  %vm618_vm7 = vweird.f32 %v547_v63  ;;  %765 = vmatpush.msra.mxu2 %v743_v61  ;;  %v802_v62 = vld [vmem:[%s1391_s1 + $0x70] sm:$0xff] }
 0x26a   :  { %v625_v25 = vor.u32 1.1754944e-38, %v624_v18  ;;  %vm623_vm9 = vcmp.eq.f32.partialorder %v622_v20, 8.507059e+37 }
 0x26b   :  { %v602_v5 = vmul.f32 %v1060_v59, %v601_v3  ;;  %1003 = vmatmul.msk.f32.gmra.mxu1 %vm484_vm2, %v671_v60  ;;  %824 = vmatpush.msrb.mxu2 %v802_v62  ;;  %v1036_v62 = vld [vmem:[%s1393_s3 + $0x2] ss:$0 sm:$0xff] }
 0x26d   :  { %v603_v8 = vadd.f32 %v1060_v59, %v602_v5 }
 0x26e   :  { %v1062_v9 = vpop.eup %1061 }
 0x26f   :  { %v614_v12 = vmul.f32 %v1062_v9, %v547_v63  ;;  %v550_v13 = vpop.xlane.xlu1 %549  ;;  %v607_v14 = vsel %vm606_vm4, %v1060_v59, %v603_v8  ;;  %vm619_vm6 = vweird.f32 %v1062_v9 }
 0x270   :  { %1063 = vrcp.f32 %v550_v13  ;;  %v612_v15 = vsel %vm609_vm5, %v611_v10, %v607_v14  ;;  %vm620_vm8 = vmor %vm618_vm7, %vm619_vm6  ;;  %v638_v31 = vand.u32 2147483648, %v550_v13  ;;  %v636_v33 = vand.u32 2147483647, %v550_v13 }
 0x271   :  { %v615_v17 = vsub.f32 1.0, %v614_v12  ;;  %v672_v1 = vmul.f32 %v1316_v6, %v612_v15  ;;  %vm632_vm11 = vweird.f32 %v550_v13 }
 0x272   :  { %v639_v36 = vor.u32 1.1754944e-38, %v638_v31  ;;  %vm637_vm13 = vcmp.eq.f32.partialorder %v636_v33, 8.507059e+37 }
 0x273   :  { %v616_v19 = vmul.f32 %v1062_v9, %v615_v17  ;;  %1004 = vmatmul.msk.f32.gmra.mxu1 %vm484_vm2, %v672_v1  ;;  %v1034_v17 = vld [vmem:[%s1393_s3] ss:$0 sm:$0xff] }
 0x275   :  { %v617_v22 = vadd.f32 %v1062_v9, %v616_v19 }
 0x276   :  { %v1064_v23 = vpop.eup %1063 }
 0x277   :  { %v628_v26 = vmul.f32 %v1064_v23, %v550_v13  ;;  %v553_v27 = vpop.xlane.xlu2 %552  ;;  %v621_v28 = vsel %vm620_vm8, %v1062_v9, %v617_v22  ;;  %vm633_vm10 = vweird.f32 %v1064_v23 }
 0x278   :  { %1065 = vrcp.f32 %v553_v27  ;;  %v626_v29 = vsel %vm623_vm9, %v625_v25, %v621_v28  ;;  %vm634_vm12 = vmor %vm632_vm11, %vm633_vm10  ;;  %v652_v42 = vand.u32 2147483648, %v553_v27  ;;  %v650_v44 = vand.u32 2147483647, %v553_v27 }
 0x279   :  { %v629_v30 = vsub.f32 1.0, %v628_v26  ;;  %v673_v6 = vmul.f32 %v1320_v11, %v626_v29  ;;  %vm646_vm15 = vweird.f32 %v553_v27 }
 0x27a   :  { %v653_v47 = vor.u32 1.1754944e-38, %v652_v42  ;;  %vm651_vm4 = vcmp.eq.f32.partialorder %v650_v44, 8.507059e+37 }
 0x27b   :  { %v630_v32 = vmul.f32 %v1064_v23, %v629_v30  ;;  %1005 = vmatmul.msk.f32.gmra.mxu1 %vm484_vm2, %v673_v6  ;;  %v1101_v30 = vmov 32.0  }
 0x27d   :  { %v631_v34 = vadd.f32 %v1064_v23, %v630_v32 }
 0x27e   :  { %v1066_v35 = vpop.eup %1065 }
 0x27f   :  { %v642_v37 = vmul.f32 %v1066_v35, %v553_v27  ;;  %v556_v38 = vpop.xlane.xlu0 %555  ;;  %v635_v39 = vsel %vm634_vm12, %v1064_v23, %v631_v34  ;;  %vm647_vm14 = vweird.f32 %v1066_v35 }
 0x280   :  { %1067 = vrcp.f32 %v556_v38  ;;  %v640_v40 = vsel %vm637_vm13, %v639_v36, %v635_v39  ;;  %vm648_vm3 = vmor %vm646_vm15, %vm647_vm14  ;;  %v666_v53 = vand.u32 2147483648, %v556_v38  ;;  %v664_v54 = vand.u32 2147483647, %v556_v38 }
 0x281   :  { %v643_v41 = vsub.f32 1.0, %v642_v37  ;;  %v674_v11 = vmul.f32 %v1324_v16, %v640_v40  ;;  %vm660_vm6 = vweird.f32 %v556_v38  ;;  %1069 = vrcp.f32 %v1101_v30 }
 0x282   :  { %v667_v56 = vor.u32 1.1754944e-38, %v666_v53  ;;  %vm665_vm8 = vcmp.eq.f32.partialorder %v664_v54, 8.507059e+37 }
 0x283   :  { %v644_v43 = vmul.f32 %v1066_v35, %v643_v41  ;;  %1006 = vmatmul.msk.f32.gmra.mxu1 %vm484_vm2, %v674_v11 }
 0x285   :  { %v645_v45 = vadd.f32 %v1066_v35, %v644_v43 }
 0x286   :  { %v1068_v46 = vpop.eup %1067 }
 0x287   :  { %v656_v48 = vmul.f32 %v1068_v46, %v556_v38  ;;  %v649_v49 = vsel %vm648_vm3, %v1066_v35, %v645_v45  ;;  %vm661_vm5 = vweird.f32 %v1068_v46  ;;  %v1070_v6 = vpop.eup %1069 }
 0x288   :  { %v654_v50 = vsel %vm651_vm4, %v653_v47, %v649_v49  ;;  %vm662_vm7 = vmor %vm660_vm6, %vm661_vm5  ;;  %v877_v31 = vmul.f32 32.0, %v1070_v6 }
 0x289   :  { %v657_v51 = vsub.f32 1.0, %v656_v48  ;;  %v675_v52 = vmul.f32 %v1328_v21, %v654_v50  ;;  %v742_v21 = vld [vmem:[%s1391_s1 + $0x60] sm:$0xff] }
 0x28a   :  { %794 = vmatpush.msra.mxu3 %v742_v21  ;;  %v878_v32 = vsub.f32 1.0, %v877_v31 }
 0x28b   :  { %v658_v16 = vmul.f32 %v1068_v46, %v657_v51  ;;  %1007 = vmatmul.msk.f32.gmra.mxu1 %vm484_vm2, %v675_v52 }
 0x28c   :  { %v879_v33 = vmul.f32 %v1070_v6, %v878_v32 }
 0x28d   :  { %v659_v55 = vadd.f32 %v1068_v46, %v658_v16 }
 0x28e   :  { %v880_v34 = vadd.f32 %v1070_v6, %v879_v33 }
 0x28f   :  { %v663_v57 = vsel %vm662_vm7, %v1068_v46, %v659_v55 }
 0x290   :  { %v668_v58 = vsel %vm665_vm8, %v667_v56, %v663_v57 }
 0x291   :  { %v676_v59 = vmul.f32 %v1332_v24, %v668_v58  ;;  %v834_v24 = vld [vmem:[%s1391_s1 + $0x78] sm:$0xff]  ;;  %v1035_v58 = vld [vmem:[%s1393_s3 + $0x1] ss:$0 sm:$0xff]  ;;  %s1103_s3 = smov 128  }
 0x292   :  { %856 = vmatpush.msrb.mxu3 %v834_v24 }
 0x293   :  { %1008 = vmatmul.msk.f32.gmra.mxu1 %vm484_vm2, %v676_v59 }
 0x2d8   :  { %v718_v63 = vpop.f32.mrf.mxu1 }
 0x2d9   :  { %1011 = vmatmul.msk.f32.vlgmr.msra.gmra.mxu3 %vm394_vm1, %v718_v63 }
 0x2e0   :  { %v721_v0 = vpop.f32.mrf.mxu1 }
 0x2e1   :  { %1012 = vmatmul.msk.f32.gmra.mxu3 %vm394_vm1, %v721_v0 }
 0x2e8   :  { %v724_v2 = vpop.f32.mrf.mxu1 }
 0x2e9   :  { %1009 = vmatmul.msk.f32.vlgmr.msra.gmra.mxu2 %vm394_vm1, %v724_v2 }
 0x2f0   :  { %v727_v3 = vpop.f32.mrf.mxu1 }
 0x2f1   :  { %1010 = vmatmul.msk.f32.gmra.mxu2 %vm394_vm1, %v727_v3 }
 0x2f8   :  { %v730_v60 = vpop.f32.mrf.mxu1 }
 0x2f9   :  { %1013 = vmatmul.msk.f32.vlgmr.msrb.gmra.mxu2 %vm394_vm1, %v730_v60 }
 0x300   :  { %v733_v4 = vpop.f32.mrf.mxu1 }
 0x301   :  { %1014 = vmatmul.msk.f32.gmra.mxu2 %vm394_vm1, %v733_v4 }
 0x308   :  { %v736_v5 = vpop.f32.mrf.mxu1 }
 0x309   :  { %1015 = vmatmul.msk.f32.vlgmr.msrb.gmra.mxu3 %vm394_vm1, %v736_v5 }
 0x310   :  { %v739_v7 = vpop.f32.mrf.mxu1 }
 0x311   :  { %1016 = vmatmul.msk.f32.gmra.mxu3 %vm394_vm1, %v739_v7  ;;  %vm881_vm1 = vweird.f32 %v1070_v6 }
 0x312   :  { %v882_v35 = vsel %vm881_vm1, %v1070_v6, %v880_v34 }
 0x35c   :  { %v796_v9 = vpop.f32.mrf.mxu3 }
 0x364   :  { %v799_v12 = vpop.f32.mrf.mxu3 }
 0x36c   :  { %v767_v8 = vpop.f32.mrf.mxu2 }
 0x36d   :  { %v797_v14 = vadd.f32 %v796_v9, %v767_v8 }
 0x374   :  { %v770_v10 = vpop.f32.mrf.mxu2 }
 0x375   :  { %v800_v22 = vadd.f32 %v799_v12, %v770_v10 }
 0x37c   :  { %v826_v13 = vpop.f32.mrf.mxu2 }
 0x37d   :  { %v832_v15 = vadd.f32 %v826_v13, %v797_v14 }
 0x384   :  { %v829_v20 = vpop.f32.mrf.mxu2 }
 0x385   :  { %v833_v25 = vadd.f32 %v829_v20, %v800_v22 }
 0x38c   :  { %v858_v1 = vpop.f32.mrf.mxu3 }
 0x38d   :  { %v864_v18 = vadd.f32 %v858_v1, %v832_v15 }
 0x38f   :  { %v868_v19 = vadd.f32 %v1034_v17, %v864_v18 }
 0x391   :  { %v870_v23 = vsel %vm26_vm0, %v868_v19, 0.0 }
 0x392   :  { %871 = vadd.xlane.f32.xlu1 %v870_v23 }
 0x394   :  { %v861_v26 = vpop.f32.mrf.mxu3 }
 0x395   :  { %v865_v27 = vadd.f32 %v861_v26, %v833_v25 }
 0x397   :  { %v869_v28 = vadd.f32 %v1034_v17, %v865_v27 }
 0x399   :  { %v873_v29 = vsel %vm26_vm0, %v869_v28, 0.0 }
 0x39a   :  { %874 = vadd.xlane.f32.xlu2 %v873_v29 }
 0x405   :  { %v872_v36 = vpop.xlane.xlu1 %871 }
 0x406   :  { %v883_v37 = vmul.f32 %v882_v35, %v872_v36 }
 0x408   :  { %v885_v38 = vsub.f32 %v868_v19, %v883_v37 }
 0x40a   :  { %v887_v39 = vmul.f32 %v885_v38, %v885_v38 }
 0x40c   :  { %v889_v40 = vsel %vm26_vm0, %v887_v39, 0.0 }
 0x40d   :  { %890 = vadd.xlane.f32.xlu0 %v889_v40  ;;  %v875_v41 = vpop.xlane.xlu2 %874 }
 0x40e   :  { %v884_v11 = vmul.f32 %v882_v35, %v875_v41 }
 0x410   :  { %v886_v42 = vsub.f32 %v869_v28, %v884_v11 }
 0x412   :  { %v888_v43 = vmul.f32 %v886_v42, %v886_v42 }
 0x414   :  { %v892_v44 = vsel %vm26_vm0, %v888_v43, 0.0 }
 0x415   :  { %893 = vadd.xlane.f32.xlu1 %v892_v44 }
 0x480   :  { %v891_v45 = vpop.xlane.xlu0 %890 }
 0x481   :  { %v895_v46 = vmul.f32 %v891_v45, %v882_v35 }
 0x483   :  { %v897_v47 = vadd.f32 1e-05, %v895_v46 }
 0x485   :  { %1071 = vrsqrt.f32 %v897_v47  ;;  %vm905_vm9 = vweird.f32 %v897_v47 }
 0x488   :  { %v894_v48 = vpop.xlane.xlu1 %893 }
 0x489   :  { %v896_v49 = vmul.f32 %v894_v48, %v882_v35 }
 0x48b   :  { %v1072_v50 = vpop.eup %1071  ;;  %v898_v51 = vadd.f32 1e-05, %v896_v49 }
 0x48c   :  { %v900_v52 = vmul.f32 %v1072_v50, %v897_v47  ;;  %vm906_vm2 = vweird.f32 %v1072_v50 }
 0x48d   :  { %1073 = vrsqrt.f32 %v898_v51  ;;  %vm907_vm10 = vmor %vm905_vm9, %vm906_vm2  ;;  %vm915_vm12 = vweird.f32 %v898_v51 }
 0x48e   :  { %v901_v53 = vmul.f32 %v1072_v50, %v900_v52 }
 0x490   :  { %v902_v16 = vmul.f32 0.5, %v901_v53 }
 0x492   :  { %v903_v54 = vsub.f32 1.5, %v902_v16 }
 0x493   :  { %v1074_v55 = vpop.eup %1073 }
 0x494   :  { %v904_v56 = vmul.f32 %v1072_v50, %v903_v54  ;;  %v910_v57 = vmul.f32 %v1074_v55, %v898_v51  ;;  %vm916_vm11 = vweird.f32 %v1074_v55 }
 0x495   :  { %vm917_vm13 = vmor %vm915_vm12, %vm916_vm11 }
 0x496   :  { %v908_v59 = vsel %vm907_vm10, %v1072_v50, %v904_v56  ;;  %v911_v21 = vmul.f32 %v1074_v55, %v910_v57 }
 0x497   :  { %v919_v61 = vmul.f32 %v908_v59, %v885_v38 }
 0x498   :  { %v912_v63 = vmul.f32 0.5, %v911_v21 }
 0x499   :  { %v923_v24 = vmul.f32 %v1035_v58, %v919_v61 }
 0x49a   :  { %v913_v0 = vsub.f32 1.5, %v912_v63 }
 0x49b   :  { %v927_v2 = vadd.f32 %v1036_v62, %v923_v24 }
 0x49c   :  { %v914_v3 = vmul.f32 %v1074_v55, %v913_v0 }
 0x49d   :  { %929 = vst.msk [vmem:[#allocation2] sm:$0xff] %vm26_vm0, %v927_v2 }
 0x49e   :  { %v918_v60 = vsel %vm917_vm13, %v1074_v55, %v914_v3 }
 0x49f   :  { %v920_v4 = vmul.f32 %v918_v60, %v886_v42 }
 0x4a1   :  { %v924_v5 = vmul.f32 %v1035_v58, %v920_v4 }
 0x4a3   :  { %v928_v7 = vadd.f32 %v1036_v62, %v924_v5 }
 0x4a5   :  { %930 = vst.msk [vmem:[#allocation2 + $0x8] sm:$0xff] %vm26_vm0, %v928_v7 }
 0x4a6   :  { %943 = dma.vmem_to_hbm [thread:$0]  %s936_s2, 256, %s938_s22, [#allocation3], %s1103_s3, %s1103_s3, %s1104_s23  }
 0x4a7   :  { %1099 = dma.done.wait [#allocation3], 256  }
 0x4a8   :  { %1100 = vsyncadd [#allocation3], 4294967040 }
 0x4a9   :  { %948 = vsyncpa [#allocation3], 1 }

</bundles_post_ra>
